<compile_context>
chip_gen: v6e
topology: v6e:2x2x1
jax: 0.10.0
libtpu: 0.0.40
codegen_flags: <defaults>
</compile_context>

<pallas_src>
import functools
import math

import jax
import jax.numpy as jnp
from jax import lax
from jax.experimental import pallas as pl
from jax.experimental.pallas import tpu as pltpu


_LANE_CANDIDATES = (1024, 512, 256, 128)     # all multiples of 128 -> unmasked vst
_TARGET_TILE_BYTES = 6 * 1024 * 1024         # per VMEM buffer (review: 6-8 MiB on v7x)
_VMEM_LIMIT_BYTES = 40 * 1024 * 1024         # 4 x 6 MiB double-buffered + headroom;
                                             # < v7x's 64 MiB physical, raises v5e's
                                             # 16 MiB scoped default.

_SUPPORTED = ("hardtanh", "relu", "elu", "leaky_relu", "gelu", "swish")


# --------------------------------------------------------------------------
# Pallas kernel: one of OpenspeechEncoder.supported_activations, applied
# elementwise to a (row_tile, lane) lane-dense tile.
# --------------------------------------------------------------------------
def _activation_kernel(x_ref, o_ref, *, activation: str, gelu_approximate: bool):
    x = x_ref[...]
    if x.dtype != jnp.float32:
        # f32 in-register compute: keeps v5e (no bf16 VPU/EUP) safe, hidden
        # under the DMA anyway.  I/O stays in the caller's dtype.
        x = x.astype(jnp.float32)

    if activation == "hardtanh":          # nn.Hardtanh(0, 20)
        y = jnp.clip(x, 0.0, 20.0)
    elif activation == "relu":            # nn.ReLU()
        y = jnp.maximum(x, 0.0)
    elif activation == "elu":             # nn.ELU(alpha=1.0)
        # keep the where-form: expm1(x) may be inf on the unselected branch,
        # which where() discards (no NaN propagation).
        y = jnp.where(x > 0.0, x, jnp.expm1(x))
    elif activation == "leaky_relu":      # nn.LeakyReLU(negative_slope=0.01)
        y = jnp.where(x > 0.0, x, 0.01 * x)
    elif activation == "gelu":            # nn.GELU()
        if gelu_approximate:
            # tanh approximation: transcendental goes to the EUP slot, keeping
            # the kernel HBM-bound on v7x.  ~1e-3 off the exact erf form.
            c = math.sqrt(2.0 / math.pi)
            y = 0.5 * x * (1.0 + jnp.tanh(c * (x + 0.044715 * x * x * x)))
        else:
            y = 0.5 * x * (1.0 + lax.erf(x * (1.0 / math.sqrt(2.0))))
    elif activation == "swish":           # Swish() == x * sigmoid(x)
        y = x * jax.nn.sigmoid(x)         # stable; sigmoid lowers to EUP
    else:
        raise ValueError(f"unsupported activation: {activation}")

    o_ref[...] = y.astype(o_ref.dtype)


# --------------------------------------------------------------------------
# Wrapper: the OpenspeechEncoder.forward interface.
#   inputs:        f32/bf16[batch, seq_length, dimension]  (padded)
#   input_lengths: i32[batch]
# Returns (outputs, output_lengths) with outputs = activation(inputs) and
# output_lengths = input_lengths (base interface passes lengths through).
# --------------------------------------------------------------------------
def openspeech_encoder_forward(inputs, input_lengths, activation: str = "hardtanh",
                               *, gelu_approximate: bool = False,
                               target_tile_bytes: int = _TARGET_TILE_BYTES):
    if activation not in _SUPPORTED:
        raise ValueError(f"unsupported activation: {activation}")

    batch, seq_len, dim = inputs.shape
    dtype = inputs.dtype
    itemsize = jnp.dtype(dtype).itemsize
    sublane = max(8, 32 // itemsize)          # 8 for f32, 16 for bf16, 32 for int8
    total = batch * seq_len * dim

    # ---- lane-dense slab layout, no pad / no slice whenever possible -------
    lane = None
    for cand in _LANE_CANDIDATES:
        if total % cand == 0:
            lane = cand
            break
    needs_pad = lane is None
    if needs_pad:
        lane = _LANE_CANDIDATES[-1]           # 128; rare fallback

    flat = jnp.ravel(inputs)                  # contiguous reshape -> free
    if needs_pad:
        # Zero padding: every supported activation maps 0 -> 0 and the pad is
        # sliced away below.  Only hit when total isn't a multiple of 128.
        padded_total = pl.cdiv(total, lane) * lane
        flat = jnp.pad(flat, (0, padded_total - total))
    else:
        padded_total = total
    n_rows = padded_total // lane
    slab = flat.reshape(n_rows, lane)

    # ---- row tiling: big tiles, overhanging last block handled by Pallas ---
    row_cap = (target_tile_bytes // (lane * itemsize)) // sublane * sublane
    row_cap = max(sublane, row_cap)
    if n_rows <= row_cap:
        row_tile = n_rows                     # full-extent block (always legal)
    else:
        row_tile = row_cap                    # multiple of sublane packing
    grid = (pl.cdiv(n_rows, row_tile),)       # last block may overhang: edge
                                              # writes are masked, OOB reads
                                              # are never stored.

    kernel = functools.partial(_activation_kernel, activation=activation,
                               gelu_approximate=gelu_approximate)

    n_transcendentals = total if activation in ("elu", "gelu", "swish") else 0
    cost = pl.CostEstimate(flops=2 * total,
                           transcendentals=n_transcendentals,
                           bytes_accessed=2 * total * itemsize)

    out_slab = pl.pallas_call(
        kernel,
        out_shape=jax.ShapeDtypeStruct((n_rows, lane), dtype),
        grid_spec=pltpu.PrefetchScalarGridSpec(
            num_scalar_prefetch=0,
            grid=grid,
            in_specs=[pl.BlockSpec((row_tile, lane), lambda r: (r, 0))],
            out_specs=pl.BlockSpec((row_tile, lane), lambda r: (r, 0)),
        ),
        compiler_params=pltpu.CompilerParams(
            dimension_semantics=("parallel",),   # sharded across v7x's 2 TCs
            vmem_limit_bytes=_VMEM_LIMIT_BYTES,
        ),
        cost_estimate=cost,
        # In-place when the caller donates the input (e.g. under jit with
        # donate_argnums); otherwise XLA inserts a defensive copy.
        input_output_aliases={0: 0},
    )(slab)

    out_flat = out_slab.reshape(-1)
    if needs_pad:
        out_flat = out_flat[:total]
    outputs = out_flat.reshape(batch, seq_len, dim)
    return outputs, input_lengths


# --------------------------------------------------------------------------
# Pure-JAX reference (mirrors the PyTorch activation definitions).
# --------------------------------------------------------------------------
def _reference(inputs, activation):
    x = inputs.astype(jnp.float32)
    if activation == "hardtanh":
        return jnp.clip(x, 0.0, 20.0)
    if activation == "relu":
        return jnp.maximum(x, 0.0)
    if activation == "elu":
        return jnp.where(x > 0.0, x, jnp.expm1(x))
    if activation == "leaky_relu":
        return jnp.where(x > 0.0, x, 0.01 * x)
    if activation == "gelu":
        return 0.5 * x * (1.0 + lax.erf(x / math.sqrt(2.0)))
    if activation == "swish":
        return x * jax.nn.sigmoid(x)
    raise ValueError(activation)


if __name__ == "__main__":
    key = jax.random.PRNGKey(0)
    batch, seq_len, dim = 2, 8, 32   # inputs: (batch, seq_length, dimension)

    k_in, k_in2 = jax.random.split(key)
    inputs = jax.random.normal(k_in, (batch, seq_len, dim), dtype=jnp.float32) * 5.0
    input_lengths = jnp.array([seq_len, seq_len - 2], dtype=jnp.int32)

    ok = True

    # References computed BEFORE kernel calls (input_output_aliases hygiene).
    refs = {act: _reference(inputs, act) for act in _SUPPORTED}
    for act in _SUPPORTED:
        out, out_lens = openspeech_encoder_forward(inputs, input_lengths, activation=act)
        out = jax.block_until_ready(out)
        if not jnp.allclose(out, refs[act], atol=1e-5, rtol=1e-5):
            ok = False
            print(f"MISMATCH for activation={act}")
        if not jnp.array_equal(out_lens, input_lengths):
            ok = False
            print(f"LENGTH MISMATCH for activation={act}")

    # Exercise the multi-step grid with an overhanging (partial) last block:
    # total = 2*125*128 = 32000 -> lane=256, n_rows=125; tiny tile cap forces
    # row_tile=8 -> grid=16 with a 5-row partial last block.
    inputs2 = jax.random.normal(k_in2, (2, 125, 128), dtype=jnp.float32) * 3.0
    lens2 = jnp.array([125, 100], dtype=jnp.int32)
    ref2 = _reference(inputs2, "swish")
    out2, _ = openspeech_encoder_forward(inputs2, lens2, activation="swish",
                                         target_tile_bytes=4096)
    out2 = jax.block_until_ready(out2)
    if not jnp.allclose(out2, ref2, atol=1e-5, rtol=1e-5):
        ok = False
        print("MISMATCH for overhang swish")

    # Exercise the rare padding fallback (total=126, no lane multiple divides).
    inputs3 = jax.random.normal(key, (2, 7, 9), dtype=jnp.float32) * 2.0
    lens3 = jnp.array([7, 5], dtype=jnp.int32)
    ref3 = _reference(inputs3, "gelu")
    out3, _ = openspeech_encoder_forward(inputs3, lens3, activation="gelu")
    out3 = jax.block_until_ready(out3)
    if not jnp.allclose(out3, ref3, atol=1e-5, rtol=1e-5):
        ok = False
        print("MISMATCH for pad-fallback gelu")

    # bf16 end-to-end (halves HBM traffic; relu is exact under the f32 roundtrip).
    inputs4 = inputs.astype(jnp.bfloat16)
    ref4 = jnp.maximum(inputs4, 0)
    out4, _ = openspeech_encoder_forward(inputs4, input_lengths, activation="relu")
    out4 = jax.block_until_ready(out4)
    if not jnp.array_equal(out4, ref4):
        ok = False
        print("MISMATCH for bf16 relu")

    if ok:
        print("KERNEL_OK")
</pallas_src>

<mosaic_0001>
module attributes {stable_mosaic.version = 11 : i64} {
  func.func @_activation_kernel(%arg0: i32, %arg1: memref<1x512xf32, #tpu.memory_space<vmem>>, %arg2: memref<1x512xf32, #tpu.memory_space<vmem>>) attributes {dimension_semantics = [#tpu.dimension_semantics<parallel>], iteration_bounds = array<i64: 1>, scalar_prefetch = 0 : i64, scratch_operands = 0 : i64, tpu.core_type = #tpu.core_type<tc>, window_params = [{transform_indices = @transform_0, window_bounds = array<i64: 1, 512>}, {transform_indices = @transform_1, window_bounds = array<i64: 1, 512>}]} {
    %c0 = arith.constant 0 : index
    %c0_0 = arith.constant 0 : index
    %0 = vector.load %arg1[%c0, %c0_0] : memref<1x512xf32, #tpu.memory_space<vmem>>, vector<1x512xf32>
    %cst = arith.constant 0.000000e+00 : f32
    %cst_1 = arith.constant 2.000000e+01 : f32
    %1 = vector.broadcast %cst : f32 to vector<1x512xf32>
    %2 = arith.maximumf %1, %0 : vector<1x512xf32>
    %3 = vector.broadcast %cst_1 : f32 to vector<1x512xf32>
    %4 = arith.minimumf %3, %2 : vector<1x512xf32>
    %c0_2 = arith.constant 0 : index
    %c0_3 = arith.constant 0 : index
    %5 = vector.load %arg2[%c0_2, %c0_3] : memref<1x512xf32, #tpu.memory_space<vmem>>, vector<1x512xf32>
    tpu.vector_store %arg2[%c0_2, %c0_3], %4 {strides = array<i32>} : memref<1x512xf32, #tpu.memory_space<vmem>>, vector<1x512xf32>,
    return
  }
  func.func @transform_0(%arg0: i32) -> (i32, i32) {
    %c0_i32 = arith.constant 0 : i32
    %c0_i32_0 = arith.constant 0 : i32
    return %arg0, %c0_i32 : i32, i32
  }
  func.func @transform_1(%arg0: i32) -> (i32, i32) {
    %c0_i32 = arith.constant 0 : i32
    %c0_i32_0 = arith.constant 0 : i32
    return %arg0, %c0_i32 : i32, i32
  }
}

</mosaic_0001>

<bundles_post_ra>
// kernel: tpu_custom_call.1
= control target key start
LH: loop header
LB: loop body
LE: loop exit
PB: predicated region body
PF: predicated region fallthrough
CT: control target
= control target key end

     0   :  { %6 = vsyncpa [#allocation3], 0  ;;  %s108_s0 = inlined_call_operand.hbm [shape: f32[1,512], index: 0, kind: input, shape index: {}, may-alias: {0,1}]   ;;  %s109_s1 = inlined_call_operand.hbm [shape: f32[1,512], index: 1, kind: output, shape index: {}, may-alias: {0,1}]  }
   0x1   :  { %7 = vsyncpa [#allocation4], 0  ;;  %s90_s6 = smov [#allocation2]  }
   0x2   :  { %s14_s7 = sshll.u32 %s90_s6, 4  ;;  %s15_s7 = int_to_ptr.vmem [resolvable:$true] %s14_s7 }
   0x3   :  { %s54_s8 = scalar_lea.vmem %s15_s7, 64  ;;  %p59_p1 = scmp.lt.s32.totalorder %s15_s7, %s15_s7 }
   0x4   :  { %p55_p0 = scmp.ne.s32.totalorder %s15_s7, %s54_s8  ;;  %p60_p2 = scmp.lt.s32.totalorder %s54_s8, %s54_s8 }
   0x6   :  { %p61_p3 = por %p60_p2, %p59_p1 }
   0x8   :  { %p62_p4 = pnand %p61_p3, %p55_p0 }
   0xa   :  { %65 = shalt.err (!%p62_p4)
}
   0xb   :  { %17 = dma.hbm_to_vmem [thread:$0]  %s108_s0, 64, %s15_s7, [#allocation3]  }
   0xc   :  { %86 = dma.done.wait [#allocation3], 64  }
   0xd   :  { %87 = vsyncadd [#allocation3], 4294967232  ;;  %v24_v0 = vlaneseq  ;;  %v21_v1 = vld [vmem:[#allocation2] sm:$0xf]  ;;  %s91_s11 = smov [#allocation5]  }
   0xe   :  { %s35_s12 = sshll.u32 %s91_s11, 4  ;;  %v22_v2 = vmax.f32 %v21_v1, 0.0  ;;  %s36_s12 = int_to_ptr.vmem [resolvable:$true] %s35_s12 }
   0xf   :  { %vm26_vm0 = vcmp.lt.s32.totalorder %v24_v0, 512  ;;  %s66_s13 = scalar_lea.vmem %s36_s12, 64  ;;  %p71_p6 = scmp.lt.s32.totalorder %s36_s12, %s36_s12 }
  0x10   :  { %v23_v3 = vmin.f32 %v22_v2, 20.0  ;;  %p67_p5 = scmp.ne.s32.totalorder %s36_s12, %s66_s13  ;;  %p72_p7 = scmp.lt.s32.totalorder %s66_s13, %s66_s13 }
  0x12   :  { %28 = vst.msk [vmem:[#allocation5] sm:$0xf] %vm26_vm0, %v23_v3  ;;  %p73_p8 = por %p72_p7, %p71_p6 }
  0x14   :  { %p74_p9 = pnand %p73_p8, %p67_p5 }
  0x16   :  { %77 = shalt.err (!%p74_p9)
}
  0x17   :  { %38 = dma.vmem_to_hbm [thread:$0]  %s36_s12, 64, %s109_s1, [#allocation4]  }
  0x18   :  { %88 = dma.done.wait [#allocation4], 64  }
  0x19   :  { %89 = vsyncadd [#allocation4], 4294967232 }
  0x1a   :  { %42 = vsyncpa [#allocation3], 1 }
  0x1b   :  { %43 = vsyncpa [#allocation4], 1 }

</bundles_post_ra>
